<compile_context>
chip_gen: v7x
topology: tpu7x:2x2x1
jax: 0.10.0
libtpu: 0.0.40
codegen_flags: <defaults>
</compile_context>

<pallas_src>
import math
from functools import partial

import jax
import jax.numpy as jnp
from jax.experimental import pallas as pl
from jax.experimental.pallas import tpu as pltpu

PAD_idx = 0
SOS_idx = 1
SCALE = math.sqrt(0.5)
LANE = 128


def _round_up(x, m):
    return (x + m - 1) // m * m


# --------------------------------------------------------------------------
# In-kernel helpers
# --------------------------------------------------------------------------

def _conv_glu(x, w_flat, bias, *, K, T, H_pad, pad_left, pad_right):
    """im2col 1-D conv + bias + GLU, fully in registers/VMEM.

    x:      (T, H_pad)            f32
    w_flat: (K*H_pad, 2*H_pad)    bf16   (tap-k rows at [k*H_pad:(k+1)*H_pad])
    bias:   (1, 2*H_pad)          f32
    returns (T, H_pad)            f32
    """
    xp = x
    if pad_left:
        xp = jnp.concatenate(
            [jnp.zeros((pad_left, H_pad), jnp.float32), xp], axis=0)
    if pad_right:
        xp = jnp.concatenate(
            [xp, jnp.zeros((pad_right, H_pad), jnp.float32)], axis=0)
    # im2col: one (T, K*H_pad) operand -> single MXU pass (no zero-init acc).
    cols = jnp.concatenate([xp[k:k + T, :] for k in range(K)], axis=-1)
    acc = jnp.dot(cols.astype(jnp.bfloat16), w_flat,
                  preferred_element_type=jnp.float32) + bias
    a = acc[:, :H_pad]
    g = jax.nn.sigmoid(acc[:, H_pad:])          # padded gate cols: sigmoid(0)*0 = 0
    return a * g


# --------------------------------------------------------------------------
# Fused encoder kernel (one grid step = one batch element)
# --------------------------------------------------------------------------

def _encoder_kernel(emb_ref, e2h_w, e2h_b, conv_w, conv_b, h2e_w, h2e_b,
                    conved_ref, combined_ref, *, L, K, T, H_pad):
    emb = emb_ref[0]                                              # (T, E_pad) f32
    x = jnp.dot(emb.astype(jnp.bfloat16), e2h_w[...],
                preferred_element_type=jnp.float32) + e2h_b[...]  # (T, H_pad)
    pad = (K - 1) // 2
    for l in range(L):                                            # static unroll
        y = _conv_glu(x, conv_w[l], conv_b[l], K=K, T=T, H_pad=H_pad,
                      pad_left=pad, pad_right=pad)
        x = (y + x) * SCALE
    conved = jnp.dot(x.astype(jnp.bfloat16), h2e_w[...],
                     preferred_element_type=jnp.float32) + h2e_b[...]
    conved_ref[0] = conved
    combined_ref[0] = (conved + emb) * SCALE


# --------------------------------------------------------------------------
# Fused decoder kernel (all layers + attention in one call; K/V resident)
# --------------------------------------------------------------------------

def _decoder_kernel(emb_ref, k_ref, v_ref, bias_ref,
                    e2h_w, e2h_b, conv_w, conv_b,
                    ah2e_w, ah2e_b, ae2h_w, ae2h_b,
                    h2e_w, h2e_b, fc_w, fc_b,
                    logits_ref, attn_ref, *, L, K, T, H_pad):
    emb = emb_ref[0]                                   # (T, E_pad)  f32
    k_enc = k_ref[0].astype(jnp.bfloat16)              # (Ts_pad, E_pad), resident
    v_enc = v_ref[0].astype(jnp.bfloat16)              # (Ts_pad, E_pad), resident
    bias = bias_ref[0]                                 # (1, Ts_pad) additive mask
    x = jnp.dot(emb.astype(jnp.bfloat16), e2h_w[...],
                preferred_element_type=jnp.float32) + e2h_b[...]   # (T, H_pad)
    p = None
    for l in range(L):                                 # static unroll
        # causal conv + GLU (left pad K-1 with zeros, no residual here)
        conved = _conv_glu(x, conv_w[l], conv_b[l], K=K, T=T, H_pad=H_pad,
                           pad_left=K - 1, pad_right=0)
        # attention block
        conved_emb = jnp.dot(conved.astype(jnp.bfloat16), ah2e_w[...],
                             preferred_element_type=jnp.float32) + ah2e_b[...]
        q = (conved_emb + emb) * SCALE                 # (T, E_pad)
        energy = jax.lax.dot_general(
            q.astype(jnp.bfloat16), k_enc, (((1,), (1,)), ((), ())),
            preferred_element_type=jnp.float32) + bias  # (T, Ts_pad)
        energy = energy - jnp.max(energy, axis=-1, keepdims=True)
        p = jnp.exp(energy)
        p = p * pl.reciprocal(jnp.sum(p, axis=-1, keepdims=True), approx=True)
        attended = jnp.dot(p.astype(jnp.bfloat16), v_enc,
                           preferred_element_type=jnp.float32)      # (T, E_pad)
        attended_h = jnp.dot(attended.astype(jnp.bfloat16), ae2h_w[...],
                             preferred_element_type=jnp.float32) + ae2h_b[...]
        x = ((conved + attended_h) * SCALE + x) * SCALE
    conved_emb = jnp.dot(x.astype(jnp.bfloat16), h2e_w[...],
                         preferred_element_type=jnp.float32) + h2e_b[...]
    logits = jnp.dot(conved_emb.astype(jnp.bfloat16), fc_w[...],
                     preferred_element_type=jnp.float32) + fc_b[...]
    logits_ref[0] = logits                              # lane-dense (OD_pad=128k)
    attn_ref[0] = p                                     # last layer, lane-dense


# --------------------------------------------------------------------------
# BlockSpec helpers
# --------------------------------------------------------------------------

def _batch_spec(shape):
    """Per-batch block: (1, *rest); batch index comes from the grid."""
    nd = len(shape)
    return pl.BlockSpec((1,) + tuple(shape[1:]),
                        lambda b: (b,) + (0,) * (nd - 1))


def _full_spec(arr):
    """Whole-array block with a constant index (fetched once, not per step)."""
    nd = arr.ndim
    return pl.BlockSpec(arr.shape, lambda b: (0,) * nd)


_COMPILER_PARAMS = pltpu.CompilerParams(dimension_semantics=("parallel",))


# --------------------------------------------------------------------------
# Wrappers (embeddings / one-time padding in plain JAX; heavy math in kernels)
# --------------------------------------------------------------------------

def encoder_forward(kp, src, cfg):
    B, Ts = src.shape
    E_pad, H_pad = kp["E_pad"], kp["H_pad"]
    K, L = cfg["kernel_size"], cfg["enc_layers"]
    tok = jnp.take(kp["enc_tok_emb"], src, axis=0)                 # (B,Ts,E_pad)
    pos = kp["enc_pos_emb"][:Ts][None, :, :]                       # (1,Ts,E_pad)
    embedded = (tok + pos).astype(jnp.float32)

    kern = partial(_encoder_kernel, L=L, K=K, T=Ts, H_pad=H_pad)
    conved, combined = pl.pallas_call(
        kern,
        grid=(B,),
        in_specs=[
            _batch_spec(embedded.shape),
            _full_spec(kp["enc_emb2hid_w"]), _full_spec(kp["enc_emb2hid_b"]),
            _full_spec(kp["enc_conv_w"]), _full_spec(kp["enc_conv_b"]),
            _full_spec(kp["enc_hid2emb_w"]), _full_spec(kp["enc_hid2emb_b"]),
        ],
        out_specs=(
            _batch_spec((B, Ts, E_pad)),
            _batch_spec((B, Ts, E_pad)),
        ),
        out_shape=(
            jax.ShapeDtypeStruct((B, Ts, E_pad), jnp.float32),
            jax.ShapeDtypeStruct((B, Ts, E_pad), jnp.float32),
        ),
        compiler_params=_COMPILER_PARAMS,
    )(embedded, kp["enc_emb2hid_w"], kp["enc_emb2hid_b"],
      kp["enc_conv_w"], kp["enc_conv_b"],
      kp["enc_hid2emb_w"], kp["enc_hid2emb_b"])

    enc_mask = (src == PAD_idx)
    return conved, combined, enc_mask


def decoder_forward(kp, dec_in, enc_out, attn_value, enc_mask, cfg):
    B, Tt = dec_in.shape
    Ts = enc_out.shape[1]
    E_pad, H_pad, OD_pad = kp["E_pad"], kp["H_pad"], kp["OD_pad"]
    K, L = cfg["kernel_size"], cfg["dec_layers"]
    Ts_pad = _round_up(Ts, LANE)

    tok = jnp.take(kp["dec_tok_emb"], dec_in, axis=0)
    pos = kp["dec_pos_emb"][:Tt][None, :, :]
    embedded = (tok + pos).astype(jnp.float32)                     # (B,Tt,E_pad)

    # One-time Ts padding so the attention energies / weights are lane-dense.
    enc_out_p = jnp.pad(enc_out, ((0, 0), (0, Ts_pad - Ts), (0, 0)))
    attn_value_p = jnp.pad(attn_value, ((0, 0), (0, Ts_pad - Ts), (0, 0)))
    # Additive mask bias: 0 for valid, -1e10 for PAD tokens (matches the
    # reference masked_fill value), -1e30 for the wrapper's Ts padding so
    # those positions get exactly-zero attention weight.
    bias = jnp.where(enc_mask, jnp.float32(-1e10), jnp.float32(0.0))
    bias = jnp.pad(bias, ((0, 0), (0, Ts_pad - Ts)), constant_values=-1e30)
    bias = bias[:, None, :]                                        # (B,1,Ts_pad)

    kern = partial(_decoder_kernel, L=L, K=K, T=Tt, H_pad=H_pad)
    logits_p, attn_p = pl.pallas_call(
        kern,
        grid=(B,),
        in_specs=[
            _batch_spec(embedded.shape),
            _batch_spec(enc_out_p.shape),
            _batch_spec(attn_value_p.shape),
            _batch_spec(bias.shape),
            _full_spec(kp["dec_emb2hid_w"]), _full_spec(kp["dec_emb2hid_b"]),
            _full_spec(kp["dec_conv_w"]), _full_spec(kp["dec_conv_b"]),
            _full_spec(kp["dec_attn_hid2emb_w"]), _full_spec(kp["dec_attn_hid2emb_b"]),
            _full_spec(kp["dec_attn_emb2hid_w"]), _full_spec(kp["dec_attn_emb2hid_b"]),
            _full_spec(kp["dec_hid2emb_w"]), _full_spec(kp["dec_hid2emb_b"]),
            _full_spec(kp["dec_fc_out_w"]), _full_spec(kp["dec_fc_out_b"]),
        ],
        out_specs=(
            _batch_spec((B, Tt, OD_pad)),
            _batch_spec((B, Tt, Ts_pad)),
        ),
        out_shape=(
            jax.ShapeDtypeStruct((B, Tt, OD_pad), jnp.float32),
            jax.ShapeDtypeStruct((B, Tt, Ts_pad), jnp.float32),
        ),
        compiler_params=_COMPILER_PARAMS,
    )(embedded, enc_out_p, attn_value_p, bias,
      kp["dec_emb2hid_w"], kp["dec_emb2hid_b"],
      kp["dec_conv_w"], kp["dec_conv_b"],
      kp["dec_attn_hid2emb_w"], kp["dec_attn_hid2emb_b"],
      kp["dec_attn_emb2hid_w"], kp["dec_attn_emb2hid_b"],
      kp["dec_hid2emb_w"], kp["dec_hid2emb_b"],
      kp["dec_fc_out_w"], kp["dec_fc_out_b"])

    return logits_p[:, :, :kp["out_dim"]], attn_p[:, :, :Ts]


def conv_s2s_forward(kp, src, src_lens, tgt, tgt_lens, teacher_forcing, cfg):
    """Mirrors ConvS2S.forward.  src_lens/tgt_lens unused (as in reference)."""
    B = src.shape[0]
    enc_out, attn_value, enc_mask = encoder_forward(kp, src, cfg)
    use_teacher_forcing = teacher_forcing >= 1.0  # deterministic stand-in for torch.rand
    # TODO(synk): greedy-decode (non-teacher-forcing) incremental-cache path not implemented.
    assert use_teacher_forcing, "only the teacher-forcing path is implemented"
    sos = jnp.full((B, 1), SOS_idx, jnp.int32)
    dec_in = jnp.concatenate([sos, tgt[:, :-1]], axis=1)
    dec_outs, attn_ws = decoder_forward(kp, dec_in, enc_out, attn_value, enc_mask, cfg)
    return dec_outs, attn_ws


# --------------------------------------------------------------------------
# Parameter init (original shapes) + kernel-layout preparation
# (lane-pad to 128, stack conv layers, flatten taps, cast MXU weights to bf16)
# --------------------------------------------------------------------------

def init_params(key, in_dim, emb_dim, h_dim, out_dim, enc_layers, dec_layers, K, max_pos):
    keys = iter(jax.random.split(key, 64))

    def nrm(shape, s=0.1):
        return jax.random.normal(next(keys), shape, jnp.float32) * s

    p = {}
    p["enc_tok_emb"] = nrm((in_dim, emb_dim))
    p["enc_pos_emb"] = nrm((max_pos, emb_dim))
    p["enc_emb2hid_w"] = nrm((emb_dim, h_dim)); p["enc_emb2hid_b"] = nrm((h_dim,))
    p["enc_hid2emb_w"] = nrm((h_dim, emb_dim)); p["enc_hid2emb_b"] = nrm((emb_dim,))
    for l in range(enc_layers):
        p[f"enc_conv{l}_w"] = nrm((K, h_dim, 2 * h_dim))   # Conv1d(H, 2H, K): (K,in,out)
        p[f"enc_conv{l}_b"] = nrm((2 * h_dim,))
    p["dec_tok_emb"] = nrm((out_dim, emb_dim))
    p["dec_pos_emb"] = nrm((max_pos, emb_dim))
    p["dec_emb2hid_w"] = nrm((emb_dim, h_dim)); p["dec_emb2hid_b"] = nrm((h_dim,))
    p["dec_hid2emb_w"] = nrm((h_dim, emb_dim)); p["dec_hid2emb_b"] = nrm((emb_dim,))
    p["dec_attn_hid2emb_w"] = nrm((h_dim, emb_dim)); p["dec_attn_hid2emb_b"] = nrm((emb_dim,))
    p["dec_attn_emb2hid_w"] = nrm((emb_dim, h_dim)); p["dec_attn_emb2hid_b"] = nrm((h_dim,))
    p["dec_fc_out_w"] = nrm((emb_dim, out_dim)); p["dec_fc_out_b"] = nrm((out_dim,))
    for l in range(dec_layers):
        p[f"dec_conv{l}_w"] = nrm((K, h_dim, 2 * h_dim))
        p[f"dec_conv{l}_b"] = nrm((2 * h_dim,))
    return p


def _pad_to(x, shape):
    pads = [(0, s - d) for d, s in zip(x.shape, shape)]
    return jnp.pad(x, pads)


def prepare_params(p, cfg):
    E, H, K = cfg["emb_dim"], cfg["h_dim"], cfg["kernel_size"]
    OD = p["dec_fc_out_w"].shape[1]
    E_pad, H_pad, OD_pad = _round_up(E, LANE), _round_up(H, LANE), _round_up(OD, LANE)
    kp = {"E_pad": E_pad, "H_pad": H_pad, "OD_pad": OD_pad, "out_dim": OD}

    def lin(wname, bname, in_p, out_p):
        kp[wname] = _pad_to(p[wname], (in_p, out_p)).astype(jnp.bfloat16)
        kp[bname] = _pad_to(p[bname], (out_p,)).reshape(1, out_p).astype(jnp.float32)

    def conv_stack(prefix, L):
        ws, bs = [], []
        for l in range(L):
            w = p[f"{prefix}{l}_w"]                     # (K, H, 2H)
            b = p[f"{prefix}{l}_b"]                     # (2H,)
            wp = jnp.zeros((K, H_pad, 2 * H_pad), jnp.float32)
            wp = wp.at[:, :H, :H].set(w[:, :, :H])                      # GLU "a" half
            wp = wp.at[:, :H, H_pad:H_pad + H].set(w[:, :, H:])         # GLU gate half
            bp = jnp.zeros((2 * H_pad,), jnp.float32)
            bp = bp.at[:H].set(b[:H]).at[H_pad:H_pad + H].set(b[H:])
            ws.append(wp.reshape(K * H_pad, 2 * H_pad))                 # flatten taps
            bs.append(bp.reshape(1, 2 * H_pad))
        return (jnp.stack(ws).astype(jnp.bfloat16),
                jnp.stack(bs).astype(jnp.float32))

    kp["enc_tok_emb"] = _pad_to(p["enc_tok_emb"], (p["enc_tok_emb"].shape[0], E_pad))
    kp["enc_pos_emb"] = _pad_to(p["enc_pos_emb"], (p["enc_pos_emb"].shape[0], E_pad))
    kp["dec_tok_emb"] = _pad_to(p["dec_tok_emb"], (p["dec_tok_emb"].shape[0], E_pad))
    kp["dec_pos_emb"] = _pad_to(p["dec_pos_emb"], (p["dec_pos_emb"].shape[0], E_pad))
    lin("enc_emb2hid_w", "enc_emb2hid_b", E_pad, H_pad)
    lin("enc_hid2emb_w", "enc_hid2emb_b", H_pad, E_pad)
    lin("dec_emb2hid_w", "dec_emb2hid_b", E_pad, H_pad)
    lin("dec_hid2emb_w", "dec_hid2emb_b", H_pad, E_pad)
    lin("dec_attn_hid2emb_w", "dec_attn_hid2emb_b", H_pad, E_pad)
    lin("dec_attn_emb2hid_w", "dec_attn_emb2hid_b", E_pad, H_pad)
    lin("dec_fc_out_w", "dec_fc_out_b", E_pad, OD_pad)
    kp["enc_conv_w"], kp["enc_conv_b"] = conv_stack("enc_conv", cfg["enc_layers"])
    kp["dec_conv_w"], kp["dec_conv_b"] = conv_stack("dec_conv", cfg["dec_layers"])
    return kp


if __name__ == "__main__":
    in_dim, emb_dim, h_dim, out_dim = 20, 32, 64, 22
    enc_layers, dec_layers, kernel_size = 2, 2, 3
    max_len = 12
    B, Ts, Tt = 2, 8, 8

    cfg = dict(emb_dim=emb_dim, h_dim=h_dim, kernel_size=kernel_size,
               enc_layers=enc_layers, dec_layers=dec_layers, max_len=max_len)

    key = jax.random.PRNGKey(0)
    pkey, skey, tkey = jax.random.split(key, 3)
    params = init_params(pkey, in_dim, emb_dim, h_dim, out_dim,
                         enc_layers, dec_layers, kernel_size, max_pos=max_len + 2)
    kparams = prepare_params(params, cfg)

    src = jax.random.randint(skey, (B, Ts), 2, in_dim).astype(jnp.int32)
    src = src.at[:, -1].set(PAD_idx)  # give the encoder mask something to mask
    tgt = jax.random.randint(tkey, (B, Tt), 2, out_dim).astype(jnp.int32)

    dec_outs, attn_ws = conv_s2s_forward(kparams, src, None, tgt, None,
                                         teacher_forcing=1.0, cfg=cfg)
    jax.block_until_ready((dec_outs, attn_ws))

    assert dec_outs.shape == (B, Tt, out_dim)
    assert attn_ws.shape == (B, Tt, Ts)
    assert bool(jnp.all(jnp.isfinite(dec_outs)))
    assert bool(jnp.all(jnp.isfinite(attn_ws)))
    print("KERNEL_OK")
</pallas_src>

<mosaic_0001>
module attributes {stable_mosaic.version = 11 : i64} {
  func.func @_encoder_kernel(%arg0: i32, %arg1: memref<1x8x128xf32, #tpu.memory_space<vmem>>, %arg2: memref<128x128xbf16, #tpu.memory_space<vmem>>, %arg3: memref<1x128xf32, #tpu.memory_space<vmem>>, %arg4: memref<2x384x256xbf16, #tpu.memory_space<vmem>>, %arg5: memref<2x1x256xf32, #tpu.memory_space<vmem>>, %arg6: memref<128x128xbf16, #tpu.memory_space<vmem>>, %arg7: memref<1x128xf32, #tpu.memory_space<vmem>>, %arg8: memref<1x8x128xf32, #tpu.memory_space<vmem>>, %arg9: memref<1x8x128xf32, #tpu.memory_space<vmem>>) attributes {dimension_semantics = [#tpu.dimension_semantics<parallel>], iteration_bounds = array<i64: 2>, scalar_prefetch = 0 : i64, scratch_operands = 0 : i64, tpu.core_type = #tpu.core_type<tc>, window_params = [{transform_indices = @transform_0, window_bounds = array<i64: 1, 8, 128>}, {pipeline_mode = #tpu.pipeline_mode<synchronous>, transform_indices = @transform_1, window_bounds = array<i64: 128, 128>}, {pipeline_mode = #tpu.pipeline_mode<synchronous>, transform_indices = @transform_2, window_bounds = array<i64: 1, 128>}, {pipeline_mode = #tpu.pipeline_mode<synchronous>, transform_indices = @transform_3, window_bounds = array<i64: 2, 384, 256>}, {pipeline_mode = #tpu.pipeline_mode<synchronous>, transform_indices = @transform_4, window_bounds = array<i64: 2, 1, 256>}, {pipeline_mode = #tpu.pipeline_mode<synchronous>, transform_indices = @transform_5, window_bounds = array<i64: 128, 128>}, {pipeline_mode = #tpu.pipeline_mode<synchronous>, transform_indices = @transform_6, window_bounds = array<i64: 1, 128>}, {transform_indices = @transform_7, window_bounds = array<i64: 1, 8, 128>}, {transform_indices = @transform_8, window_bounds = array<i64: 1, 8, 128>}]} {
    %c0 = arith.constant 0 : index
    %c0_0 = arith.constant 0 : index
    %c0_1 = arith.constant 0 : index
    %0 = vector.load %arg1[%c0, %c0_0, %c0_1] : memref<1x8x128xf32, #tpu.memory_space<vmem>>, vector<1x8x128xf32>
    %1 = vector.shape_cast %0 : vector<1x8x128xf32> to vector<8x128xf32>
    %2 = arith.truncf %1 : vector<8x128xf32> to vector<8x128xbf16>
    %c0_2 = arith.constant 0 : index
    %c0_3 = arith.constant 0 : index
    %3 = vector.load %arg2[%c0_2, %c0_3] : memref<128x128xbf16, #tpu.memory_space<vmem>>, vector<128x128xbf16>
    %cst = arith.constant dense<0.000000e+00> : vector<8x128xf32>
    %4 = tpu.matmul %2, %3, %cst {dimension_numbers = #tpu.dot_dimension_numbers<[1], [0], [0], [1], [0, 0, 1, 1], [], []>} : vector<8x128xbf16>, vector<128x128xbf16>, vector<8x128xf32> -> vector<8x128xf32>
    %c0_4 = arith.constant 0 : index
    %c0_5 = arith.constant 0 : index
    %5 = vector.load %arg3[%c0_4, %c0_5] : memref<1x128xf32, #tpu.memory_space<vmem>>, vector<1x128xf32>
    %6 = vector.broadcast %5 : vector<1x128xf32> to vector<8x128xf32>
    %7 = arith.addf %4, %6 : vector<8x128xf32>
    %c0_6 = arith.constant 0 : index
    %c0_7 = arith.constant 0 : index
    %c0_8 = arith.constant 0 : index
    %8 = vector.load %arg4[%c0_6, %c0_7, %c0_8] : memref<2x384x256xbf16, #tpu.memory_space<vmem>>, vector<1x384x256xbf16>
    %9 = vector.shape_cast %8 : vector<1x384x256xbf16> to vector<384x256xbf16>
    %c0_9 = arith.constant 0 : index
    %c0_10 = arith.constant 0 : index
    %c0_11 = arith.constant 0 : index
    %10 = vector.load %arg5[%c0_9, %c0_10, %c0_11] : memref<2x1x256xf32, #tpu.memory_space<vmem>>, vector<1x1x256xf32>
    %11 = vector.shape_cast %10 : vector<1x1x256xf32> to vector<1x256xf32>
    %cst_12 = arith.constant 0.000000e+00 : f32
    %12 = vector.broadcast %cst_12 : f32 to vector<1x128xf32>
    %13 = tpu.concatenate %12, %7 in 0 : vector<1x128xf32>, vector<8x128xf32> -> vector<9x128xf32>
    %cst_13 = arith.constant 0.000000e+00 : f32
    %14 = vector.broadcast %cst_13 : f32 to vector<1x128xf32>
    %15 = tpu.concatenate %13, %14 in 0 : vector<9x128xf32>, vector<1x128xf32> -> vector<10x128xf32>
    %16 = vector.extract_strided_slice %15 {offsets = [0, 0], sizes = [8, 128], strides = [1, 1]} : vector<10x128xf32> to vector<8x128xf32>
    %17 = vector.extract_strided_slice %15 {offsets = [1, 0], sizes = [8, 128], strides = [1, 1]} : vector<10x128xf32> to vector<8x128xf32>
    %18 = vector.extract_strided_slice %15 {offsets = [2, 0], sizes = [8, 128], strides = [1, 1]} : vector<10x128xf32> to vector<8x128xf32>
    %19 = tpu.concatenate %16, %17, %18 in 1 : vector<8x128xf32>, vector<8x128xf32>, vector<8x128xf32> -> vector<8x384xf32>
    %20 = arith.truncf %19 : vector<8x384xf32> to vector<8x384xbf16>
    %cst_14 = arith.constant dense<0.000000e+00> : vector<8x256xf32>
    %21 = tpu.matmul %20, %9, %cst_14 {dimension_numbers = #tpu.dot_dimension_numbers<[1], [0], [0], [1], [0, 0, 1, 1], [], []>} : vector<8x384xbf16>, vector<384x256xbf16>, vector<8x256xf32> -> vector<8x256xf32>
    %22 = vector.broadcast %11 : vector<1x256xf32> to vector<8x256xf32>
    %23 = arith.addf %21, %22 : vector<8x256xf32>
    %24 = vector.extract_strided_slice %23 {offsets = [0, 0], sizes = [8, 128], strides = [1, 1]} : vector<8x256xf32> to vector<8x128xf32>
    %25 = vector.extract_strided_slice %23 {offsets = [0, 128], sizes = [8, 128], strides = [1, 1]} : vector<8x256xf32> to vector<8x128xf32>
    %26 = arith.negf %25 : vector<8x128xf32>
    %27 = math.exp %26 : vector<8x128xf32>
    %cst_15 = arith.constant 1.000000e+00 : f32
    %28 = vector.broadcast %cst_15 : f32 to vector<8x128xf32>
    %29 = arith.addf %28, %27 : vector<8x128xf32>
    %30 = arith.divf %28, %29 : vector<8x128xf32>
    %31 = arith.mulf %24, %30 : vector<8x128xf32>
    %32 = arith.addf %31, %7 : vector<8x128xf32>
    %cst_16 = arith.constant 0.707106769 : f32
    %33 = vector.broadcast %cst_16 : f32 to vector<8x128xf32>
    %34 = arith.mulf %32, %33 : vector<8x128xf32>
    %c1 = arith.constant 1 : index
    %c0_17 = arith.constant 0 : index
    %c0_18 = arith.constant 0 : index
    %35 = vector.load %arg4[%c1, %c0_17, %c0_18] : memref<2x384x256xbf16, #tpu.memory_space<vmem>>, vector<1x384x256xbf16>
    %36 = vector.shape_cast %35 : vector<1x384x256xbf16> to vector<384x256xbf16>
    %c1_19 = arith.constant 1 : index
    %c0_20 = arith.constant 0 : index
    %c0_21 = arith.constant 0 : index
    %37 = vector.load %arg5[%c1_19, %c0_20, %c0_21] : memref<2x1x256xf32, #tpu.memory_space<vmem>>, vector<1x1x256xf32>
    %38 = vector.shape_cast %37 : vector<1x1x256xf32> to vector<1x256xf32>
    %cst_22 = arith.constant 0.000000e+00 : f32
    %39 = vector.broadcast %cst_22 : f32 to vector<1x128xf32>
    %40 = tpu.concatenate %39, %34 in 0 : vector<1x128xf32>, vector<8x128xf32> -> vector<9x128xf32>
    %cst_23 = arith.constant 0.000000e+00 : f32
    %41 = vector.broadcast %cst_23 : f32 to vector<1x128xf32>
    %42 = tpu.concatenate %40, %41 in 0 : vector<9x128xf32>, vector<1x128xf32> -> vector<10x128xf32>
    %43 = vector.extract_strided_slice %42 {offsets = [0, 0], sizes = [8, 128], strides = [1, 1]} : vector<10x128xf32> to vector<8x128xf32>
    %44 = vector.extract_strided_slice %42 {offsets = [1, 0], sizes = [8, 128], strides = [1, 1]} : vector<10x128xf32> to vector<8x128xf32>
    %45 = vector.extract_strided_slice %42 {offsets = [2, 0], sizes = [8, 128], strides = [1, 1]} : vector<10x128xf32> to vector<8x128xf32>
    %46 = tpu.concatenate %43, %44, %45 in 1 : vector<8x128xf32>, vector<8x128xf32>, vector<8x128xf32> -> vector<8x384xf32>
    %47 = arith.truncf %46 : vector<8x384xf32> to vector<8x384xbf16>
    %cst_24 = arith.constant dense<0.000000e+00> : vector<8x256xf32>
    %48 = tpu.matmul %47, %36, %cst_24 {dimension_numbers = #tpu.dot_dimension_numbers<[1], [0], [0], [1], [0, 0, 1, 1], [], []>} : vector<8x384xbf16>, vector<384x256xbf16>, vector<8x256xf32> -> vector<8x256xf32>
    %49 = vector.broadcast %38 : vector<1x256xf32> to vector<8x256xf32>
    %50 = arith.addf %48, %49 : vector<8x256xf32>
    %51 = vector.extract_strided_slice %50 {offsets = [0, 0], sizes = [8, 128], strides = [1, 1]} : vector<8x256xf32> to vector<8x128xf32>
    %52 = vector.extract_strided_slice %50 {offsets = [0, 128], sizes = [8, 128], strides = [1, 1]} : vector<8x256xf32> to vector<8x128xf32>
    %53 = arith.negf %52 : vector<8x128xf32>
    %54 = math.exp %53 : vector<8x128xf32>
    %cst_25 = arith.constant 1.000000e+00 : f32
    %55 = vector.broadcast %cst_25 : f32 to vector<8x128xf32>
    %56 = arith.addf %55, %54 : vector<8x128xf32>
    %57 = arith.divf %55, %56 : vector<8x128xf32>
    %58 = arith.mulf %51, %57 : vector<8x128xf32>
    %59 = arith.addf %58, %34 : vector<8x128xf32>
    %cst_26 = arith.constant 0.707106769 : f32
    %60 = vector.broadcast %cst_26 : f32 to vector<8x128xf32>
    %61 = arith.mulf %59, %60 : vector<8x128xf32>
    %62 = arith.truncf %61 : vector<8x128xf32> to vector<8x128xbf16>
    %c0_27 = arith.constant 0 : index
    %c0_28 = arith.constant 0 : index
    %63 = vector.load %arg6[%c0_27, %c0_28] : memref<128x128xbf16, #tpu.memory_space<vmem>>, vector<128x128xbf16>
    %cst_29 = arith.constant dense<0.000000e+00> : vector<8x128xf32>
    %64 = tpu.matmul %62, %63, %cst_29 {dimension_numbers = #tpu.dot_dimension_numbers<[1], [0], [0], [1], [0, 0, 1, 1], [], []>} : vector<8x128xbf16>, vector<128x128xbf16>, vector<8x128xf32> -> vector<8x128xf32>
    %c0_30 = arith.constant 0 : index
    %c0_31 = arith.constant 0 : index
    %65 = vector.load %arg7[%c0_30, %c0_31] : memref<1x128xf32, #tpu.memory_space<vmem>>, vector<1x128xf32>
    %66 = vector.broadcast %65 : vector<1x128xf32> to vector<8x128xf32>
    %67 = arith.addf %64, %66 : vector<8x128xf32>
    %c0_32 = arith.constant 0 : index
    %c0_33 = arith.constant 0 : index
    %c0_34 = arith.constant 0 : index
    %68 = vector.load %arg8[%c0_32, %c0_33, %c0_34] : memref<1x8x128xf32, #tpu.memory_space<vmem>>, vector<1x8x128xf32>
    %69 = vector.shape_cast %68 : vector<1x8x128xf32> to vector<8x128xf32>
    %70 = vector.shape_cast %67 : vector<8x128xf32> to vector<1x8x128xf32>
    tpu.vector_store %arg8[%c0_32, %c0_33, %c0_34], %70 {strides = array<i32>} : memref<1x8x128xf32, #tpu.memory_space<vmem>>, vector<1x8x128xf32>,
    %71 = arith.addf %67, %1 : vector<8x128xf32>
    %cst_35 = arith.constant 0.707106769 : f32
    %72 = vector.broadcast %cst_35 : f32 to vector<8x128xf32>
    %73 = arith.mulf %71, %72 : vector<8x128xf32>
    %c0_36 = arith.constant 0 : index
    %c0_37 = arith.constant 0 : index
    %c0_38 = arith.constant 0 : index
    %74 = vector.load %arg9[%c0_36, %c0_37, %c0_38] : memref<1x8x128xf32, #tpu.memory_space<vmem>>, vector<1x8x128xf32>
    %75 = vector.shape_cast %74 : vector<1x8x128xf32> to vector<8x128xf32>
    %76 = vector.shape_cast %73 : vector<8x128xf32> to vector<1x8x128xf32>
    tpu.vector_store %arg9[%c0_36, %c0_37, %c0_38], %76 {strides = array<i32>} : memref<1x8x128xf32, #tpu.memory_space<vmem>>, vector<1x8x128xf32>,
    return
  }
  func.func @transform_0(%arg0: i32) -> (i32, i32, i32) {
    %c0_i32 = arith.constant 0 : i32
    %c0_i32_0 = arith.constant 0 : i32
    %c0_i32_1 = arith.constant 0 : i32
    return %arg0, %c0_i32, %c0_i32_0 : i32, i32, i32
  }
  func.func @transform_1(%arg0: i32) -> (i32, i32) {
    %c0_i32 = arith.constant 0 : i32
    %c0_i32_0 = arith.constant 0 : i32
    %c0_i32_1 = arith.constant 0 : i32
    return %c0_i32, %c0_i32_0 : i32, i32
  }
  func.func @transform_2(%arg0: i32) -> (i32, i32) {
    %c0_i32 = arith.constant 0 : i32
    %c0_i32_0 = arith.constant 0 : i32
    %c0_i32_1 = arith.constant 0 : i32
    return %c0_i32, %c0_i32_0 : i32, i32
  }
  func.func @transform_3(%arg0: i32) -> (i32, i32, i32) {
    %c0_i32 = arith.constant 0 : i32
    %c0_i32_0 = arith.constant 0 : i32
    %c0_i32_1 = arith.constant 0 : i32
    %c0_i32_2 = arith.constant 0 : i32
    return %c0_i32, %c0_i32_0, %c0_i32_1 : i32, i32, i32
  }
  func.func @transform_4(%arg0: i32) -> (i32, i32, i32) {
    %c0_i32 = arith.constant 0 : i32
    %c0_i32_0 = arith.constant 0 : i32
    %c0_i32_1 = arith.constant 0 : i32
    %c0_i32_2 = arith.constant 0 : i32
    return %c0_i32, %c0_i32_0, %c0_i32_1 : i32, i32, i32
  }
  func.func @transform_5(%arg0: i32) -> (i32, i32) {
    %c0_i32 = arith.constant 0 : i32
    %c0_i32_0 = arith.constant 0 : i32
    %c0_i32_1 = arith.constant 0 : i32
    return %c0_i32, %c0_i32_0 : i32, i32
  }
  func.func @transform_6(%arg0: i32) -> (i32, i32) {
    %c0_i32 = arith.constant 0 : i32
    %c0_i32_0 = arith.constant 0 : i32
    %c0_i32_1 = arith.constant 0 : i32
    return %c0_i32, %c0_i32_0 : i32, i32
  }
  func.func @transform_7(%arg0: i32) -> (i32, i32, i32) {
    %c0_i32 = arith.constant 0 : i32
    %c0_i32_0 = arith.constant 0 : i32
    %c0_i32_1 = arith.constant 0 : i32
    return %arg0, %c0_i32, %c0_i32_0 : i32, i32, i32
  }
  func.func @transform_8(%arg0: i32) -> (i32, i32, i32) {
    %c0_i32 = arith.constant 0 : i32
    %c0_i32_0 = arith.constant 0 : i32
    %c0_i32_1 = arith.constant 0 : i32
    return %arg0, %c0_i32, %c0_i32_0 : i32, i32, i32
  }
}

</mosaic_0001>

<bundles_post_ra>
// kernel: tpu_custom_call.1
= control target key start
LH: loop header
LB: loop body
LE: loop exit
PB: predicated region body
PF: predicated region fallthrough
CT: control target
= control target key end

     0   :  { %s2736_s0 = inlined_call_operand.hbm [shape: f32[2,8,128], index: 0, kind: input, shape index: {}]   ;;  %s2737_s1 = inlined_call_operand.hbm [shape: bf16[128,128], index: 1, kind: input, shape index: {}]   ;;  %s2738_s2 = inlined_call_operand.vmem [shape: f32[1,128], index: 2, kind: input, shape index: {}]   ;;  %s2739_s3 = inlined_call_operand.hbm [shape: bf16[2,384,256], index: 3, kind: input, shape index: {}]   ;;  %s2740_s4 = inlined_call_operand.vmem [shape: f32[2,1,256], index: 4, kind: input, shape index: {}]   ;;  %s2741_s5 = inlined_call_operand.hbm [shape: bf16[128,128], index: 5, kind: input, shape index: {}]   ;;  %s2742_s6 = inlined_call_operand.vmem [shape: f32[1,128], index: 6, kind: input, shape index: {}]   ;;  %s2743_s7 = inlined_call_operand.hbm [shape: f32[2,8,128], index: 7, kind: output, shape index: {0}]   ;;  %s2744_s8 = inlined_call_operand.hbm [shape: f32[2,8,128], index: 8, kind: output, shape index: {1}]  }
   0x1   :  { %2752 = sst [smem:[#allocation20_spill]] %s2737_s1 }
   0x2   :  { %14 = vsyncpa [#allocation3], 0 }
   0x3   :  { %16 = vsyncpa [#allocation3 + $0x1], 0 }
   0x4   :  { %17 = vsyncpa [#allocation6], 0 }
   0x5   :  { %18 = vsyncpa [#allocation9], 0 }
   0x6   :  { %19 = vsyncpa [#allocation4], 0 }
   0x7   :  { %21 = vsyncpa [#allocation4 + $0x1], 0 }
   0x8   :  { %22 = vsyncpa [#allocation12], 0 }
   0x9   :  { %24 = vsyncpa [#allocation12 + $0x1], 0  ;;  %s2347_s27 = smov 0   ;;  %s2349_s28 = smov 0  }
   0xa   :  { %s2351_s29 = smov 0   ;;  %s2353_s30 = smov 0  }
   0xb LB: > { %2753 = sst [smem:[#allocation18_spill]] %s2275_s27  ;;  %s2368_s9 = sadd.s32 4294967295, %s2287_s30   ;;  %s2287_s30 = sphi %s2353_s30, %s2781_s30   ;;  %s2283_s29 = sphi %s2351_s29, %s2780_s29   ;;  %s2279_s28 = sphi %s2349_s28, %s2779_s28   ;;  %s2275_s27 = sphi %s2347_s27, %s2778_s27  }
   0xc   : > { %s1592_s10 = sadd.s32 4294967294, %s2287_s30   ;;  %p50_p0 = scmp.ne.s32.totalorder %s2279_s28, %s2275_s27 }
   0xd   : > { %p2745_p1 = scmp.eq.s32.totalorder %s2368_s9, 0  ;;  %p206_p3 = scmp.eq.s32.totalorder %s1592_s10, 1 }
   0xe   : > { %p1593_p5 = scmp.ge.s32.totalorder %s2287_s30, 1  ;;  %p239_p7 = scmp.lt.s32.totalorder %s2287_s30, 3 }
   0xf   : > { %p2377_p4 = por %p2745_p1, %p50_p0  ;;  %p2382_p6 = por %p206_p3, %p50_p0 }
  0x10   : > { %p2387_p8 = pnand %p1593_p5, %p239_p7  ;;  %s2289_s14 = smov [#allocation5]  }
  0x11   : > { %s2754_s11 = scalar_select %p2377_p4, 1, 0 }
  0x12   : > { %s2755_s12 = scalar_select %p2382_p6, 1, 0 }
  0x13   : > { %s2757_s13 = scalar_select %p2387_p8, 1, 0 }
  0x14   : > { %2756 = sst [smem:[#allocation19_spill]] %s2755_s12  ;;  %s251_s15 = sshll.u32 %s2289_s14, 4  ;;  %s2391_s15 = int_to_ptr.vmem [resolvable:$true] %s251_s15 }
  0x15   : > { %p1828_p9 = pneg %p2387_p8  ;;  %s2290_s17 = smov [#allocation7]  }
  0x16   : > { %s267_s18 = sshll.u32 %s2290_s17, 4  ;;  %s2759_s1 = sld [smem:[#allocation20_spill]]  ;;  %s2402_s18 = int_to_ptr.vmem [resolvable:$true] %s267_s18 }
  0x17   : > { %p2398_p11 = pnand %p1828_p9, %p2745_p1 }
  0x19   : > { %p2412_p13 = pneg %p2398_p11 }
  0x1c   : > { %s2067_s21 = scalar_lea.hbm %s2759_s1, 1024 }
  0x1d   : > { %p2068_p12 = scmp.ne.s32.totalorder %s2759_s1, %s2067_s21  ;;  %p2074_p5 = scmp.lt.u32.totalorder %s2067_s21, %s2759_s1 }
  0x1f   : > { %p2070_p0 = pnand %p2412_p13, %p2068_p12 }
  0x21   : > { %p2071_p3 = pneg %p2070_p0 }
  0x23   : > { %p2076_p7 = pnand %p2074_p5, %p2071_p3 }
  0x25   : > { %2079 = shalt.err (!%p2076_p7)
}
  0x26   : > { %s2080_s10 = scalar_lea.vmem %s2391_s15, 1024  ;;  %p2088_p2 = scmp.lt.s32.totalorder %s2391_s15, %s2391_s15 }
  0x27   : > { %p2081_p9 = scmp.ne.s32.totalorder %s2391_s15, %s2080_s10  ;;  %p2089_p6 = scmp.lt.s32.totalorder %s2080_s10, %s2080_s10 }
  0x29   : > { %p2083_p10 = pnand %p2081_p9, %p2412_p13  ;;  %p2090_p12 = por %p2089_p6, %p2088_p2 }
  0x2b   : > { %p2084_p1 = pneg %p2083_p10 }
  0x2d   : > { %p2091_p0 = pnand %p2090_p12, %p2084_p1 }
  0x2f   : > { %2094 = shalt.err (!%p2091_p0)
}
  0x30   : > { %s2747_s14 = smov 64   ;;  %s2748_s17 = smov 4  }
  0x31   : > { %1831 = dma.hbm_to_vmem [thread:$0]  (!%p2398_p11), %s2759_s1, 1024, %s2391_s15, [#allocation6], %s2747_s14, %s2747_s14, %s2748_s17  }
  0x32   : > { %s2095_s23 = scalar_lea.hbm %s2739_s3, 12288 }
  0x33   : > { %p2096_p1 = scmp.ne.s32.totalorder %s2739_s3, %s2095_s23  ;;  %p2102_p10 = scmp.lt.u32.totalorder %s2095_s23, %s2739_s3 }
  0x35   : > { %p2098_p2 = pnand %p2096_p1, %p2412_p13 }
  0x37   : > { %p2099_p6 = pneg %p2098_p2 }
  0x39   : > { %p2104_p3 = pnand %p2102_p10, %p2099_p6 }
  0x3b   : > { %2107 = shalt.err (!%p2104_p3)
}
  0x3c   : > { %s2108_s15 = scalar_lea.vmem %s2402_s18, 12288  ;;  %p2116_p12 = scmp.lt.s32.totalorder %s2402_s18, %s2402_s18 }
  0x3d   : > { %p2109_p5 = scmp.ne.s32.totalorder %s2402_s18, %s2108_s15  ;;  %p2117_p0 = scmp.lt.s32.totalorder %s2108_s15, %s2108_s15 }
  0x3f   : > { %p2111_p7 = pnand %p2109_p5, %p2412_p13  ;;  %p2118_p1 = por %p2117_p0, %p2116_p12 }
  0x41   : > { %p2112_p9 = pneg %p2111_p7 }
  0x43   : > { %p2119_p2 = pnand %p2118_p1, %p2112_p9 }
  0x45   : > { %2122 = shalt.err (!%p2119_p2)
}
  0x46   : > { %s2293_s19 = smov 128   ;;  %s2294_s12 = smov 8  }
  0x47   : > { %1834 = dma.hbm_to_vmem [thread:$0]  (!%p2398_p11), %s2739_s3, 12288, %s2402_s18, [#allocation6], %s2293_s19, %s2293_s19, %s2294_s12  }
  0x48   : > { %s2295_s22 = smov [#allocation8]   ;;  %s2460_s25 = sadd.s32 1, %s2287_s30  }
  0x49   : > { %s283_s23 = sshll.u32 %s2295_s22, 4  ;;  %s2123_s15 = scalar_lea.hbm %s2741_s5, 1024  ;;  %s284_s23 = int_to_ptr.vmem [resolvable:$true] %s283_s23 }
  0x4a   : > { %p2124_p6 = scmp.ne.s32.totalorder %s2741_s5, %s2123_s15  ;;  %p2130_p5 = scmp.lt.u32.totalorder %s2123_s15, %s2741_s5 }
  0x4c   : > { %p2126_p10 = pnand %p2124_p6, %p2412_p13 }
  0x4e   : > { %p2127_p3 = pneg %p2126_p10 }
  0x50   : > { %p2132_p7 = pnand %p2130_p5, %p2127_p3 }
  0x52   : > { %2135 = shalt.err (!%p2132_p7)
}
  0x53   : > { %s2136_s18 = scalar_lea.vmem %s284_s23, 1024  ;;  %p2144_p1 = scmp.lt.s32.totalorder %s284_s23, %s284_s23 }
  0x54   : > { %p2137_p9 = scmp.ne.s32.totalorder %s284_s23, %s2136_s18  ;;  %p2145_p2 = scmp.lt.s32.totalorder %s2136_s18, %s2136_s18 }
  0x56   : > { %p2139_p12 = pnand %p2137_p9, %p2412_p13  ;;  %p2146_p4 = por %p2145_p2, %p2144_p1 }
  0x58   : > { %p2140_p0 = pneg %p2139_p12 }
  0x5a   : > { %p2147_p8 = pnand %p2146_p4, %p2140_p0 }
  0x5c   : > { %2150 = shalt.err (!%p2147_p8)
}
  0x5d   : > { %s2761_s14 = smov 4   ;;  %s2762_s17 = smov 64  }
  0x5e   : > { %1837 = dma.hbm_to_vmem [thread:$0]  (!%p2398_p11), %s2741_s5, 1024, %s284_s23, [#allocation9], %s2762_s17, %s2762_s17, %s2761_s14  }
  0x5f   : > { %s34_s24 = ssub.s32 %s2287_s30, %s2460_s25  ;;  %s37_s16 = sadd.s32 1, %s2283_s29 }
  0x60   : > { %p35_p4 = scmp.eq.s32.totalorder %s34_s24, 0  ;;  %p44_p8 = scmp.ne.s32.totalorder %s2283_s29, %s2279_s28 }
  0x61   : > { %p45_p13 = scmp.eq.s32.totalorder %s2287_s30, 0  ;;  %p1852_p6 = scmp.lt.s32.totalorder %s2287_s30, 2 }
  0x62   : > { %s2491_s19 = scalar_select %p35_p4, %s2283_s29, %s37_s16  }
  0x63   : > { %p46_p10 = por %p45_p13, %p44_p8  ;;  %p2763_p3 = scmp.eq.s32.totalorder %s2368_s9, 1 }
  0x64   : > { %s300_s20 = sand.u32 1, %s2283_s29   ;;  %s1599_s21 = sshll.u32 %s2287_s30, 7 }
  0x65   : > { %p2495_p5 = por %p2763_p3, %p44_p8  ;;  %s1598_s22 = sshll.u32 %s300_s20, 3 }
  0x66   : > { %s2504_s23 = scalar_lea.hbm %s2736_s0, %s1599_s21  ;;  %s304_s15 = scalar_lea.vmem [#allocation2], %s1598_s22 }
  0x67   : > { %s311_s18 = sshll.u32 %s304_s15, 4  ;;  %p2506_p11 = pnand %p1852_p6, %p46_p10  ;;  %s2510_s18 = int_to_ptr.vmem [resolvable:$true] %s311_s18 }
  0x68   : > { %s301_s17 = scalar_lea.sflag [#allocation3], %s300_s20  ;;  %s2151_s1 = scalar_lea.hbm %s2504_s23, 128 }
  0x69   : > { %p2152_p7 = scmp.ne.s32.totalorder %s2504_s23, %s2151_s1  ;;  %p2153_p9 = pneg %p2506_p11 }
  0x6a   : > { %s2156_s16 = scalar_lea.hbm %s2736_s0, 256  ;;  %p2157_p1 = scmp.lt.u32.totalorder %s2504_s23, %s2736_s0 }
  0x6b   : > { %p2154_p12 = pnand %p2153_p9, %p2152_p7  ;;  %p2158_p2 = scmp.lt.u32.totalorder %s2156_s16, %s2151_s1 }
  0x6c   : > { %p2160_p8 = scmp.lt.u32.totalorder %s2151_s1, %s2504_s23 }
  0x6d   : > { %p2155_p0 = pneg %p2154_p12  ;;  %p2159_p4 = por %p2158_p2, %p2157_p1 }
  0x6f   : > { %p2161_p13 = por %p2160_p8, %p2159_p4 }
  0x71   : > { %p2162_p6 = pnand %p2161_p13, %p2155_p0 }
  0x73   : > { %2165 = shalt.err (!%p2162_p6)
}
  0x74   : > { %s2166_s20 = scalar_lea.vmem %s2510_s18, 128  ;;  %s2296_s26 = smov [#allocation2]  }
  0x75   : > { %p2167_p10 = scmp.ne.s32.totalorder %s2510_s18, %s2166_s20  ;;  %s2171_s10 = sshll.u32 %s2296_s26, 4  ;;  %s2172_s10 = int_to_ptr.vmem [resolvable:$false] %s2171_s10 }
  0x76   : > { %s2173_s15 = scalar_lea.vmem %s2172_s10, 256  ;;  %p2174_p12 = scmp.lt.s32.totalorder %s2510_s18, %s2172_s10 }
  0x77   : > { %p2169_p3 = pnand %p2167_p10, %p2153_p9  ;;  %p2175_p1 = scmp.lt.s32.totalorder %s2173_s15, %s2166_s20 }
  0x79   : > { %p2170_p7 = pneg %p2169_p3  ;;  %p2176_p2 = por %p2175_p1, %p2174_p12 }
  0x7b   : > { %p2177_p4 = pnand %p2176_p2, %p2170_p7 }
  0x7d   : > { %2180 = shalt.err (!%p2177_p4)
}
  0x7e   : > { %1841 = dma.hbm_to_vmem [thread:$0]  (!%p2506_p11), %s2504_s23, 128, %s2510_s18, %s301_s17  }
  0x7f   : > { %p2766_p0 = scmp.ne.s32.totalorder %s2757_s13, 0 }
  0x80   : > { %s2540_s1 = sand.u32 (!%p2766_p0), 1, %s2279_s28   ;;  %p2767_p9 = scmp.ne.s32.totalorder (!%p2766_p0), %s2754_s11, 0 }
  0x81   : > { %320 = sbr.rel (%p2766_p0) target bundleno = 1220 (0x4c4), region = 48  ;;  %s2543_s27 = sshll.u32 (!%p2766_p0), %s2540_s1, 3 }
  0x82   : > { %s323_s24 = scalar_lea.sflag (!%p2766_p0), [#allocation3], %s2540_s1  ;;  %s326_s16 = scalar_lea.vmem (!%p2766_p0), [#allocation2], %s2543_s27 }
  0x88   : > { %2254 = dma.done.wait (%p2767_p9), %s323_s24, 128  }
  0x89   : > { %2256 = vsyncadd (%p2767_p9), %s323_s24, 4294967168  ;;  %p2768_p11 = scmp.eq.s32.totalorder %s2368_s9, 0 }
  0x8b   : > { %2258 = dma.done.wait (%p2768_p11), [#allocation6], 13312   ;;  %p2769_p8 = pmov %p2768_p11 }
  0x8d   : > { %2260 = vsyncadd (%p2769_p8), [#allocation6], 4294953984  ;;  %p2770_p13 = pmov %p2769_p8 }
  0x8e   : > { %p2771_p6 = pmov %p2769_p8 }
  0x8f   : > { %2262 = dma.done.wait (%p2770_p13), [#allocation9], 1024  }
  0x90   : > { %2264 = vsyncadd (%p2771_p6), [#allocation9], 4294966272  ;;  %v2297_v0 = vmov 0.0   ;;  %vm2298_vm0 = vmmov 0   ;;  %v1899_v1 = vld [vmem:[#allocation5] sm:$0xff]   ;;  %v1900_v2 = vld [vmem:[#allocation5 + $0x8] sm:$0xff]  }
  0x91   : > { %1758 = vmatprep.subr.bf16.mxu0 %v2297_v0  ;;  %1774 = vmatprep.mubr.msk.bf16.mxu0 %vm2298_vm0, %v2297_v0  ;;  %v1901_v3 = vld [vmem:[#allocation5 + $0x10] sm:$0xff]   ;;  %v1907_v4 = vld [vmem:[#allocation7 + $0x4] ss:$8 sps:$4 sm:$0xff]   ;;  %v1909_v5 = vld [vmem:[#allocation7] ss:$8 sps:$4 sm:$0xff]   ;;  %vm542_vm1 = vcmask 1040384  }
  0x92   : > { %1759 = vmatpush3.bf16.msra.mxu0 %v1899_v1  ;;  %v1902_v6 = vld [vmem:[#allocation5 + $0x18] sm:$0xff]   ;;  %811 = vmatprep.subr.bf16.mxu1 %v1907_v4  ;;  %v1913_v9 = vld [vmem:[#allocation7 + $0x24] ss:$8 sps:$4 sm:$0xff]   ;;  %v1915_v11 = vld [vmem:[#allocation7 + $0x20] ss:$8 sps:$4 sm:$0xff]   ;;  %vm547_vm2 = vcmask 1046528  }
  0x93   : > { %1760 = vmatprep.subr.bf16.mxu0 %v2297_v0  ;;  %v1910_v7 = vld [vmem:[#allocation7 + $0x14] ss:$8 sps:$4 sm:$0xff]   ;;  %812 = vmatpush1.bf16.msra.mxu1 %v1909_v5  ;;  %v1912_v8 = vld [vmem:[#allocation7 + $0x10] ss:$8 sps:$4 sm:$0xff]   ;;  %v1903_v10 = vld [vmem:[#allocation5 + $0x20] sm:$0xff]   ;;  %vm552_vm5 = vcmask 1045504  }
  0x94   : > { %813 = vmatprep.subr.bf16.mxu1 %v1910_v7  ;;  %v1916_v12 = vld [vmem:[#allocation7 + $0x34] ss:$8 sps:$4 sm:$0xff]   ;;  %v1904_v13 = vld [vmem:[#allocation5 + $0x28] sm:$0xff]   ;;  %v1918_v14 = vld [vmem:[#allocation7 + $0x30] ss:$8 sps:$4 sm:$0xff]   ;;  %s1736_s20 = sshll.u32 %s2368_s9, 7 }
  0x95   : > { %v1919_v15 = vld [vmem:[#allocation7 + $0x44] ss:$8 sps:$4 sm:$0xff]   ;;  %v1905_v16 = vld [vmem:[#allocation5 + $0x30] sm:$0xff]   ;;  %v1921_v17 = vld [vmem:[#allocation7 + $0x40] ss:$8 sps:$4 sm:$0xff]   ;;  %s368_s26 = scalar_lea.vmem [#allocation10], %s2543_s27 }
  0x96   : > { %1761 = vmatpush3.bf16.msra.mxu0 %v1900_v2  ;;  %v1906_v18 = vld [vmem:[#allocation5 + $0x38] sm:$0xff]   ;;  %v1925_v22 = vld [vmem:[#allocation7 + $0x64] ss:$8 sps:$4 sm:$0xff]   ;;  %v1927_v24 = vld [vmem:[#allocation7 + $0x60] ss:$8 sps:$4 sm:$0xff]   ;;  %s1448_s10 = sshll.u32 %s368_s26, 4  ;;  %s2654_s10 = int_to_ptr.vmem [resolvable:$true] %s1448_s10 }
  0x97   : > { %1762 = vmatprep.subr.bf16.mxu0 %v2297_v0  ;;  %814 = vmatpush1.bf16.msra.mxu1 %v1912_v8  ;;  %v1922_v19 = vld [vmem:[#allocation7 + $0x54] ss:$8 sps:$4 sm:$0xff]   ;;  %v1924_v21 = vld [vmem:[#allocation7 + $0x50] ss:$8 sps:$4 sm:$0xff]   ;;  %v1931_v27 = vld [vmem:[#allocation7 + $0x84] ss:$8 sps:$4 sm:$0xff]  }
  0x98   : > { %815 = vmatprep.subr.bf16.mxu1 %v1913_v9  ;;  %v2570_v20 = vld [vmem:[%s326_s16] sm:$0xff]  ;;  %v1933_v28 = vld [vmem:[#allocation7 + $0x80] ss:$8 sps:$4 sm:$0xff]   ;;  %v1937_v31 = vld [vmem:[#allocation7 + $0xa4] ss:$8 sps:$4 sm:$0xff]   ;;  %v2299_v9 = vmov 0   ;;  %s2652_s16 = scalar_lea.hbm %s2743_s7, %s1736_s20 }
  0x99   : > { %v378_v23 = vpack.c.bf16 %v2570_v20, %v2570_v20  ;;  %v1928_v25 = vld [vmem:[#allocation7 + $0x74] ss:$8 sps:$4 sm:$0xff]   ;;  %v1930_v26 = vld [vmem:[#allocation7 + $0x70] ss:$8 sps:$4 sm:$0xff]   ;;  %v1939_v32 = vld [vmem:[#allocation7 + $0xa0] ss:$8 sps:$4 sm:$0xff]  }
  0x9a   : > { %1763 = vmatpush3.bf16.msra.mxu0 %v1901_v3  ;;  %v1934_v29 = vld [vmem:[#allocation7 + $0x94] ss:$8 sps:$4 sm:$0xff]   ;;  %v1936_v30 = vld [vmem:[#allocation7 + $0x90] ss:$8 sps:$4 sm:$0xff]   ;;  %v1943_v35 = vld [vmem:[#allocation7 + $0xc4] ss:$8 sps:$4 sm:$0xff]  }
  0x9b   : > { %1764 = vmatprep.subr.bf16.mxu0 %v2297_v0  ;;  %816 = vmatpush1.bf16.msra.mxu1 %v1915_v11  ;;  %v1940_v33 = vld [vmem:[#allocation7 + $0xb4] ss:$8 sps:$4 sm:$0xff]   ;;  %v1942_v34 = vld [vmem:[#allocation7 + $0xb0] ss:$8 sps:$4 sm:$0xff]   ;;  %v1945_v36 = vld [vmem:[#allocation7 + $0xc0] ss:$8 sps:$4 sm:$0xff]  }
  0x9c   : > { %817 = vmatprep.subr.bf16.mxu1 %v1916_v12  ;;  %v1946_v37 = vld [vmem:[#allocation7 + $0xd4] ss:$8 sps:$4 sm:$0xff]   ;;  %v1948_v38 = vld [vmem:[#allocation7 + $0xd0] ss:$8 sps:$4 sm:$0xff]   ;;  %v1949_v39 = vld [vmem:[#allocation7 + $0xe4] ss:$8 sps:$4 sm:$0xff]  }
  0x9d   : > { %v1951_v40 = vld [vmem:[#allocation7 + $0xe0] ss:$8 sps:$4 sm:$0xff]   ;;  %v1952_v41 = vld [vmem:[#allocation7 + $0xf4] ss:$8 sps:$4 sm:$0xff]   ;;  %v1954_v42 = vld [vmem:[#allocation7 + $0xf0] ss:$8 sps:$4 sm:$0xff]  }
  0x9e   : > { %1765 = vmatpush3.bf16.msra.mxu0 %v1902_v6  ;;  %v1957_v43 = vld [vmem:[#allocation7 + $0x104] ss:$8 sps:$4 sm:$0xff]   ;;  %v1979_v44 = vld [vmem:[#allocation7 + $0x180] ss:$8 sps:$4 sm:$0xff]   ;;  %v1984_v46 = vld [vmem:[#allocation7 + $0x194] ss:$8 sps:$4 sm:$0xff]  }
  0x9f   : > { %1766 = vmatprep.subr.bf16.mxu0 %v2297_v0  ;;  %818 = vmatpush1.bf16.msra.mxu1 %v1918_v14  ;;  %v1981_v45 = vld [vmem:[#allocation7 + $0x184] ss:$8 sps:$4 sm:$0xff]   ;;  %v1982_v47 = vld [vmem:[#allocation7 + $0x190] ss:$8 sps:$4 sm:$0xff]   ;;  %v1985_v49 = vld [vmem:[#allocation7 + $0x1a0] ss:$8 sps:$4 sm:$0xff]  }
  0xa0   : > { %819 = vmatprep.subr.bf16.mxu1 %v1919_v15  ;;  %v1987_v48 = vld [vmem:[#allocation7 + $0x1a4] ss:$8 sps:$4 sm:$0xff]   ;;  %v1990_v50 = vld [vmem:[#allocation7 + $0x1b4] ss:$8 sps:$4 sm:$0xff]   ;;  %v1988_v51 = vld [vmem:[#allocation7 + $0x1b0] ss:$8 sps:$4 sm:$0xff]  }
  0xa1   : > { %v1993_v52 = vld [vmem:[#allocation7 + $0x1c4] ss:$8 sps:$4 sm:$0xff]   ;;  %v1991_v53 = vld [vmem:[#allocation7 + $0x1c0] ss:$8 sps:$4 sm:$0xff]   ;;  %v1607_v54 = vld [vmem:[%s2738_s2] ss:$0 sm:$0xff] }
  0xa2   : > { %1767 = vmatpush3.bf16.msra.mxu0 %v1903_v10  ;;  %vm2584_vm3 = vmneg %vm542_vm1  ;;  %v1955_v5 = vld [vmem:[#allocation7 + $0x100] ss:$8 sps:$4 sm:$0xff]   ;;  %v1960_v7 = vld [vmem:[#allocation7 + $0x114] ss:$8 sps:$4 sm:$0xff]   ;;  %s375_s11 = scalar_lea.vmem [#allocation11], %s2543_s27  ;;  %s1430_s23 = scalar_lea.sflag [#allocation4], %s2540_s1 }
  0xa3   : > { %1768 = vmatprep.subr.bf16.mxu0 %v2297_v0  ;;  %820 = vmatpush1.bf16.msra.mxu1 %v1921_v17  ;;  %vm1666_vm4 = vmpackc.low %vm2584_vm3, %vm2584_vm3  ;;  %v1958_v8 = vld [vmem:[#allocation7 + $0x110] ss:$8 sps:$4 sm:$0xff]   ;;  %v1963_v10 = vld [vmem:[#allocation7 + $0x124] ss:$8 sps:$4 sm:$0xff]   ;;  %s2659_s13 = sshll.u32 %s375_s11, 4  ;;  %s2181_s18 = scalar_lea.vmem %s2654_s10, 128  ;;  %s2692_s13 = int_to_ptr.vmem [resolvable:$true] %s2659_s13 }
  0xa4   : > { %821 = vmatprep.subr.bf16.mxu1 %v1922_v19  ;;  %v1961_v11 = vld [vmem:[#allocation7 + $0x120] ss:$8 sps:$4 sm:$0xff]   ;;  %v1966_v12 = vld [vmem:[#allocation7 + $0x134] ss:$8 sps:$4 sm:$0xff]   ;;  %v1969_v14 = vld [vmem:[#allocation7 + $0x144] ss:$8 sps:$4 sm:$0xff]   ;;  %p2182_p10 = scmp.ne.s32.totalorder %s2654_s10, %s2181_s18 }
  0xa5   : > { %v1967_v15 = vld [vmem:[#allocation7 + $0x140] ss:$8 sps:$4 sm:$0xff]   ;;  %v1970_v17 = vld [vmem:[#allocation7 + $0x150] ss:$8 sps:$4 sm:$0xff]   ;;  %v2044_v2 = vld [vmem:[#allocation7 + $0x2d4] ss:$8 sps:$4 sm:$0xff]  }
  0xa6   : > { %1769 = vmatpush3.bf16.msra.mxu0 %v1904_v13  ;;  %v1964_v13 = vld [vmem:[#allocation7 + $0x130] ss:$8 sps:$4 sm:$0xff]   ;;  %v1973_v19 = vld [vmem:[#allocation7 + $0x160] ss:$8 sps:$4 sm:$0xff]   ;;  %p2183_p3 = pnand %p2182_p10, %p2495_p5  ;;  %s2300_s14 = smov [#allocation10]  }
  0xa7   : > { %1770 = vmatprep.subr.bf16.mxu0 %v2297_v0  ;;  %822 = vmatpush1.bf16.msra.mxu1 %v1924_v21  ;;  %v1978_v21 = vld [vmem:[#allocation7 + $0x174] ss:$8 sps:$4 sm:$0xff]   ;;  %s2185_s17 = sshll.u32 %s2300_s14, 4  ;;  %s2186_s17 = int_to_ptr.vmem [resolvable:$false] %s2185_s17 }
  0xa8   : > { %823 = vmatprep.subr.bf16.mxu1 %v1925_v22  ;;  %p2184_p7 = pneg %p2183_p3  ;;  %s2187_s21 = scalar_lea.vmem %s2186_s17, 256 }
  0xa9   : > { %p2188_p12 = scmp.lt.s32.totalorder %s2654_s10, %s2186_s17  ;;  %p2189_p1 = scmp.lt.s32.totalorder %s2187_s21, %s2181_s18 }
  0xaa   : > { %1771 = vmatpush3.bf16.msra.mxu0 %v1905_v16  ;;  %v1972_v16 = vld [vmem:[#allocation7 + $0x154] ss:$8 sps:$4 sm:$0xff]  }
  0xab   : > { %1772 = vmatprep.subr.bf16.mxu0 %v2297_v0  ;;  %824 = vmatpush1.bf16.msra.mxu1 %v1927_v24  ;;  %v1976_v24 = vld [vmem:[#allocation7 + $0x170] ss:$8 sps:$4 sm:$0xff]   ;;  %p2190_p2 = por %p2189_p1, %p2188_p12 }
  0xac   : > { %825 = vmatprep.subr.bf16.mxu1 %v1928_v25 }
  0xad   : > { %p2191_p4 = pnand %p2190_p2, %p2184_p7 }
  0xae   : > { %1773 = vmatpush3.bf16.msra.mxu0 %v1906_v18  ;;  %v1975_v18 = vld [vmem:[#allocation7 + $0x164] ss:$8 sps:$4 sm:$0xff]  }
  0xaf   : > { %826 = vmatpush1.bf16.msra.mxu1 %v1930_v26  ;;  %1222 = vmatprep.subr.bf16.mxu0 %v1981_v45  ;;  %v2023_v45 = vld [vmem:[#allocation7 + $0x264] ss:$8 sps:$4 sm:$0xff]  }
  0xb0   : > { %827 = vmatprep.subr.bf16.mxu1 %v1931_v27  ;;  %v1996_v27 = vld [vmem:[#allocation7 + $0x1d4] ss:$8 sps:$4 sm:$0xff]  }
  0xb1   : > { %1775 = vmatmul.mubr.bf16.vlgmr.msra.gmra.mrb[0].mxu0 %v378_v23 }
  0xb2   : > { %1223 = vmatpush1.bf16.msra.mxu0 %v1979_v44  ;;  %v2020_v44 = vld [vmem:[#allocation7 + $0x254] ss:$8 sps:$4 sm:$0xff]  }
  0xb3   : > { %828 = vmatpush1.bf16.msra.mxu1 %v1933_v28  ;;  %1224 = vmatprep.subr.bf16.mxu0 %v1984_v46  ;;  %v1994_v28 = vld [vmem:[#allocation7 + $0x1d0] ss:$8 sps:$4 sm:$0xff]   ;;  %v2021_v46 = vld [vmem:[#allocation7 + $0x260] ss:$8 sps:$4 sm:$0xff]  }
  0xb4   : > { %829 = vmatprep.subr.bf16.mxu1 %v1934_v29  ;;  %v1999_v29 = vld [vmem:[#allocation7 + $0x1e4] ss:$8 sps:$4 sm:$0xff]  }
  0xb6   : > { %1225 = vmatpush1.bf16.msra.mxu0 %v1982_v47  ;;  %v2026_v47 = vld [vmem:[#allocation7 + $0x274] ss:$8 sps:$4 sm:$0xff]  }
  0xb7   : > { %830 = vmatpush1.bf16.msra.mxu1 %v1936_v30  ;;  %1226 = vmatprep.subr.bf16.mxu0 %v1987_v48  ;;  %v1997_v30 = vld [vmem:[#allocation7 + $0x1e0] ss:$8 sps:$4 sm:$0xff]   ;;  %v2024_v48 = vld [vmem:[#allocation7 + $0x270] ss:$8 sps:$4 sm:$0xff]  }
  0xb8   : > { %831 = vmatprep.subr.bf16.mxu1 %v1937_v31  ;;  %v2002_v31 = vld [vmem:[#allocation7 + $0x1f4] ss:$8 sps:$4 sm:$0xff]  }
  0xba   : > { %1227 = vmatpush1.bf16.msra.mxu0 %v1985_v49  ;;  %v2029_v49 = vld [vmem:[#allocation7 + $0x284] ss:$8 sps:$4 sm:$0xff]  }
  0xbb   : > { %832 = vmatpush1.bf16.msra.mxu1 %v1939_v32  ;;  %1228 = vmatprep.subr.bf16.mxu0 %v1990_v50  ;;  %v2000_v32 = vld [vmem:[#allocation7 + $0x1f0] ss:$8 sps:$4 sm:$0xff]   ;;  %v561_v50 = vlaneseq }
  0xbc   : > { %833 = vmatprep.subr.bf16.mxu1 %v1940_v33  ;;  %v2005_v33 = vld [vmem:[#allocation7 + $0x204] ss:$8 sps:$4 sm:$0xff]  }
  0xbe   : > { %1229 = vmatpush1.bf16.msra.mxu0 %v1988_v51  ;;  %v2602_v51 = vshrl.u32 %v561_v50, 7 }
  0xbf   : > { %834 = vmatpush1.bf16.msra.mxu1 %v1942_v34  ;;  %1230 = vmatprep.subr.bf16.mxu0 %v1993_v52  ;;  %v2003_v34 = vld [vmem:[#allocation7 + $0x200] ss:$8 sps:$4 sm:$0xff]  }
  0xc0   : > { %835 = vmatprep.subr.bf16.mxu1 %v1943_v35  ;;  %v2008_v35 = vld [vmem:[#allocation7 + $0x214] ss:$8 sps:$4 sm:$0xff]   ;;  %v567_v52 = vsub.s32 1, %v2602_v51 }
  0xc2   : > { %1231 = vmatpush1.bf16.msra.mxu0 %v1991_v53  ;;  %v538_v53 = vld [vmem:[%s2740_s4] sm:$0x3] }
  0xc3   : > { %836 = vmatpush1.bf16.msra.mxu1 %v1945_v36  ;;  %1232 = vmatprep.subr.bf16.mxu0 %v1996_v27  ;;  %v2006_v36 = vld [vmem:[#allocation7 + $0x210] ss:$8 sps:$4 sm:$0xff]  }
  0xc4   : > { %837 = vmatprep.subr.bf16.mxu1 %v1946_v37  ;;  %v2011_v37 = vld [vmem:[#allocation7 + $0x224] ss:$8 sps:$4 sm:$0xff]   ;;  %v2042_v27 = vld [vmem:[#allocation7 + $0x2d0] ss:$8 sps:$4 sm:$0xff]  }
  0xc6   : > { %1233 = vmatpush1.bf16.msra.mxu0 %v1994_v28  ;;  %v2047_v28 = vld [vmem:[#allocation7 + $0x2e4] ss:$8 sps:$4 sm:$0xff]  }
  0xc7   : > { %838 = vmatpush1.bf16.msra.mxu1 %v1948_v38  ;;  %1234 = vmatprep.subr.bf16.mxu0 %v1999_v29  ;;  %v2009_v38 = vld [vmem:[#allocation7 + $0x220] ss:$8 sps:$4 sm:$0xff]   ;;  %v2050_v29 = vld [vmem:[#allocation7 + $0x2f4] ss:$8 sps:$4 sm:$0xff]  }
  0xc8   : > { %839 = vmatprep.subr.bf16.mxu1 %v1949_v39  ;;  %v2014_v39 = vld [vmem:[#allocation7 + $0x234] ss:$8 sps:$4 sm:$0xff]  }
  0xca   : > { %1235 = vmatpush1.bf16.msra.mxu0 %v1997_v30 }
  0xcb   : > { %840 = vmatpush1.bf16.msra.mxu1 %v1951_v40  ;;  %1236 = vmatprep.subr.bf16.mxu0 %v2002_v31  ;;  %v2012_v40 = vld [vmem:[#allocation7 + $0x230] ss:$8 sps:$4 sm:$0xff]  }
  0xcc   : > { %841 = vmatprep.subr.bf16.mxu1 %v1952_v41  ;;  %v2017_v41 = vld [vmem:[#allocation7 + $0x244] ss:$8 sps:$4 sm:$0xff]  }
  0xce   : > { %1237 = vmatpush1.bf16.msra.mxu0 %v2000_v32  ;;  %v2048_v32 = vld [vmem:[#allocation7 + $0x2f0] ss:$8 sps:$4 sm:$0xff]  }
  0xcf   : > { %842 = vmatpush1.bf16.msra.mxu1 %v1954_v42  ;;  %1238 = vmatprep.subr.bf16.mxu0 %v2005_v33  ;;  %v2015_v42 = vld [vmem:[#allocation7 + $0x240] ss:$8 sps:$4 sm:$0xff]  }
  0xd0   : > { %852 = vmatprep.subr.bf16.mxu1 %v1957_v43  ;;  %v2018_v43 = vld [vmem:[#allocation7 + $0x250] ss:$8 sps:$4 sm:$0xff]  }
  0xd2   : > { %1239 = vmatpush1.bf16.msra.mxu0 %v2003_v34 }
  0xd3   : > { %1240 = vmatprep.subr.bf16.mxu0 %v2008_v35  ;;  %v2051_v35 = vld [vmem:[#allocation8] sm:$0xff]  }
  0xd6   : > { %1241 = vmatpush1.bf16.msra.mxu0 %v2006_v36  ;;  %v2052_v36 = vld [vmem:[#allocation8 + $0x8] sm:$0xff]  }
  0xd7   : > { %1242 = vmatprep.subr.bf16.mxu0 %v2011_v37  ;;  %v2053_v37 = vld [vmem:[#allocation8 + $0x10] sm:$0xff]  }
  0xda   : > { %1243 = vmatpush1.bf16.msra.mxu0 %v2009_v38  ;;  %v2054_v38 = vld [vmem:[#allocation8 + $0x18] sm:$0xff]  }
  0xdb   : > { %1244 = vmatprep.subr.bf16.mxu0 %v2014_v39  ;;  %v2055_v39 = vld [vmem:[#allocation8 + $0x20] sm:$0xff]  }
  0xde   : > { %1245 = vmatpush1.bf16.msra.mxu0 %v2012_v40  ;;  %v2056_v40 = vld [vmem:[#allocation8 + $0x28] sm:$0xff]  }
  0xdf   : > { %1246 = vmatprep.subr.bf16.mxu0 %v2017_v41  ;;  %v2057_v41 = vld [vmem:[#allocation8 + $0x30] sm:$0xff]  }
  0xe2   : > { %1247 = vmatpush1.bf16.msra.mxu0 %v2015_v42  ;;  %v2058_v42 = vld [vmem:[#allocation8 + $0x38] sm:$0xff]  }
  0xe3   : > { %1248 = vmatprep.subr.bf16.mxu0 %v2020_v44 }
  0xe6   : > { %1249 = vmatpush1.bf16.msra.mxu0 %v2018_v43  ;;  %v1670_v43 = vld [vmem:[%s2740_s4 + $0x2] sm:$0x3] }
  0xe7   : > { %1250 = vmatprep.subr.bf16.mxu0 %v2023_v45  ;;  %v979_v44 = vrot.slane %v1670_v43, %v567_v52 }
  0xea   : > { %1251 = vmatpush1.bf16.msra.mxu0 %v2021_v46 }
  0xeb   : > { %1252 = vmatprep.subr.bf16.mxu0 %v2026_v47 }
  0xee   : > { %1253 = vmatpush1.bf16.msra.mxu0 %v2024_v48 }
  0xef   : > { %1263 = vmatprep.subr.bf16.mxu0 %v2029_v49 }
 0x184   : > { %v484_v55 = vpop.f32.mrb[0].mxu0 }
 0x185   : > { %v2578_v56 = vadd.f32 %v1607_v54, %v484_v55  ;;  %v1776_v57 = vpop.f32.mrb[1].mxu0  ;;  %v568_v54 = vrot.slane %v538_v53, %v567_v52 }
 0x186   : > { %v487_v58 = vpop.f32.mrb[2].mxu0 }
 0x187   : > { %v540_v59 = vrot.slane %v2578_v56, 7  ;;  %v1777_v60 = vpop.f32.mrb[3].mxu0 }
 0x189   : > { %v543_v61 = vsel %vm542_vm1, 0.0, %v540_v59  ;;  %v544_v62 = vsel %vm542_vm1, %v540_v59, 0.0  ;;  %v1667_v6 = vpack.c.bf16 %v540_v59, %v540_v59 }
 0x18a   : > { %v548_v63 = vrot.slane %v543_v61, 1  ;;  %v549_v1 = vrot.slane %v544_v62, 1  ;;  %v553_v22 = vrot.slane %v543_v61, 2  ;;  %v554_v23 = vrot.slane %v544_v62, 2 }
 0x18c   : > { %v550_v3 = vsel %vm547_vm2, %v548_v63, %v549_v1  ;;  %v555_v25 = vsel %vm552_vm5, %v553_v22, %v554_v23  ;;  %v563_v1 = vsub.s32 0, %v2602_v51  ;;  %v2033_v22 = vld [vmem:[#allocation7 + $0x2a0] ss:$8 sps:$4 sm:$0xff]   ;;  %v2038_v23 = vld [vmem:[#allocation7 + $0x2b4] ss:$8 sps:$4 sm:$0xff]  }
 0x18d   : > { %v558_v4 = vpack.c.bf16 %v550_v3, %v550_v3  ;;  %v559_v26 = vpack.c.bf16 %v555_v25, %v555_v25  ;;  %v2041_v25 = vld [vmem:[#allocation7 + $0x2c4] ss:$8 sps:$4 sm:$0xff]  }
 0x18e   : > { %v564_v3 = vrot.slane %v538_v53, %v563_v1 }
 0x18f   : > { %843 = vmatprep.mubr.bf16.mxu1 %v558_v4 }
 0x190   : > { %1668 = vmatmul.mubr.msk.bf16.vlgmr.msra.gmra.mrb[0].mxu1 %vm1666_vm4, %v1667_v6 }
 0x191   : > { %853 = vmatpush1.bf16.msra.mxu1 %v1955_v5  ;;  %884 = vmatprep.mubr.bf16.mxu1 %v2299_v9 }
 0x192   : > { %854 = vmatprep.subr.bf16.mxu1 %v1960_v7 }
 0x195   : > { %855 = vmatpush1.bf16.msra.mxu1 %v1958_v8 }
 0x196   : > { %856 = vmatprep.subr.bf16.mxu1 %v1963_v10 }
 0x199   : > { %857 = vmatpush1.bf16.msra.mxu1 %v1961_v11 }
 0x19a   : > { %858 = vmatprep.subr.bf16.mxu1 %v1966_v12 }
 0x19d   : > { %859 = vmatpush1.bf16.msra.mxu1 %v1964_v13 }
 0x19e   : > { %860 = vmatprep.subr.bf16.mxu1 %v1969_v14 }
 0x1a1   : > { %861 = vmatpush1.bf16.msra.mxu1 %v1967_v15 }
 0x1a2   : > { %862 = vmatprep.subr.bf16.mxu1 %v1972_v16 }
 0x1a5   : > { %863 = vmatpush1.bf16.msra.mxu1 %v1970_v17  ;;  %v2027_v17 = vld [vmem:[#allocation7 + $0x280] ss:$8 sps:$4 sm:$0xff]  }
 0x1a6   : > { %864 = vmatprep.subr.bf16.mxu1 %v1975_v18 }
 0x1a9   : > { %865 = vmatpush1.bf16.msra.mxu1 %v1973_v19  ;;  %v2032_v19 = vld [vmem:[#allocation7 + $0x294] ss:$8 sps:$4 sm:$0xff]  }
 0x1aa   : > { %866 = vmatprep.subr.bf16.mxu1 %v1978_v21  ;;  %v2035_v21 = vld [vmem:[#allocation7 + $0x2a4] ss:$8 sps:$4 sm:$0xff]  }
 0x1ad   : > { %867 = vmatpush1.bf16.msra.mxu1 %v1976_v24  ;;  %v2036_v24 = vld [vmem:[#allocation7 + $0x2b0] ss:$8 sps:$4 sm:$0xff]  }
 0x1ae   : > { %1778 = vmatprep.subr.bf16.mxu1 %v2297_v0 }
 0x1b0   : > { %885 = vmatmul.mubr.bf16.vlgmr.msra.gmra.mrb[0].mxu1 %v559_v26  ;;  %v2039_v26 = vld [vmem:[#allocation7 + $0x2c0] ss:$8 sps:$4 sm:$0xff]  }
 0x1b1   : > { %1794 = vmatprep.mubr.msk.bf16.mxu1 %vm2298_vm0, %v2297_v0  ;;  %1779 = vmatpush3.bf16.msra.mxu1 %v2051_v35 }
 0x1b2   : > { %1780 = vmatprep.subr.bf16.mxu1 %v2297_v0 }
 0x1b5   : > { %1781 = vmatpush3.bf16.msra.mxu1 %v2052_v36 }
 0x1b6   : > { %1782 = vmatprep.subr.bf16.mxu1 %v2297_v0 }
 0x1b9   : > { %1783 = vmatpush3.bf16.msra.mxu1 %v2053_v37 }
 0x1ba   : > { %1784 = vmatprep.subr.bf16.mxu1 %v2297_v0 }
 0x1bd   : > { %1785 = vmatpush3.bf16.msra.mxu1 %v2054_v38 }
 0x1be   : > { %1786 = vmatprep.subr.bf16.mxu1 %v2297_v0 }
 0x1c1   : > { %1787 = vmatpush3.bf16.msra.mxu1 %v2055_v39 }
 0x1c2   : > { %1788 = vmatprep.subr.bf16.mxu1 %v2297_v0 }
 0x1c5   : > { %1789 = vmatpush3.bf16.msra.mxu1 %v2056_v40 }
 0x1c6   : > { %1790 = vmatprep.subr.bf16.mxu1 %v2297_v0 }
 0x1c9   : > { %1791 = vmatpush3.bf16.msra.mxu1 %v2057_v41 }
 0x1ca   : > { %1792 = vmatprep.subr.bf16.mxu1 %v2297_v0  ;;  %v975_v0 = vrot.slane %v1670_v43, %v563_v1 }
 0x1cd   : > { %1793 = vmatpush3.bf16.msra.mxu1 %v2058_v42 }
 0x283   : > { %v886_v55 = vpop.f32.mrb[0].mxu1 }
 0x284   : > { %v888_v57 = vpop.f32.mrb[1].mxu1  ;;  %v1798_v4 = vadd.f32 %v886_v55, %v564_v3 }
 0x285   : > { %v1799_v58 = vadd.f32 %v888_v57, %v568_v54  ;;  %v890_v59 = vpop.f32.mrb[2].mxu1 }
 0x286   : > { %v891_v60 = vpop.f32.mrb[3].mxu1 }
 0x287   : > { %v1669_v61 = vmul.f32 -1.442695, %v1799_v58 }
 0x289   : > { %2059 = vpow2.f32 %v1669_v61  ;;  %v1725_v61 = vld [vmem:[%s2742_s6] ss:$0 sm:$0xff] }
 0x293   : > { %v2060_v62 = vpop.eup %2059 }
 0x294   : > { %v896_v63 = vadd.f32 1.0, %v2060_v62 }
 0x296   : > { %2061 = vrcp.f32 %v896_v63 }
 0x2a0   : > { %v2062_v5 = vpop.eup %2061 }
 0x2a1   : > { %v899_v6 = vmul.f32 %v2062_v5, %v1798_v4 }
 0x2a3   : > { %v900_v7 = vadd.f32 %v899_v6, %v2578_v56  ;;  %v2030_v56 = vld [vmem:[#allocation7 + $0x290] ss:$8 sps:$4 sm:$0xff]  }
 0x2a5   : > { %v2614_v8 = vmul.f32 0.70710677, %v900_v7 }
 0x2a7   : > { %v954_v10 = vrot.slane %v2614_v8, 7 }
 0x2a9   : > { %v956_v11 = vsel %vm542_vm1, 0.0, %v954_v10  ;;  %v957_v12 = vsel %vm542_vm1, %v954_v10, 0.0  ;;  %v1722_v18 = vpack.c.bf16 %v954_v10, %v954_v10 }
 0x2aa   : > { %v960_v13 = vrot.slane %v956_v11, 1  ;;  %v961_v14 = vrot.slane %v957_v12, 1  ;;  %v964_v30 = vrot.slane %v956_v11, 2  ;;  %v965_v31 = vrot.slane %v957_v12, 2 }
 0x2ac   : > { %v962_v15 = vsel %vm547_vm2, %v960_v13, %v961_v14  ;;  %v966_v33 = vsel %vm552_vm5, %v964_v30, %v965_v31 }
 0x2ad   : > { %v969_v16 = vpack.c.bf16 %v962_v15, %v962_v15  ;;  %v970_v34 = vpack.c.bf16 %v966_v33, %v966_v33 }
 0x2af   : > { %1254 = vmatprep.mubr.bf16.mxu0 %v969_v16 }
 0x2b0   : > { %1723 = vmatmul.mubr.msk.bf16.vlgmr.msra.gmra.mrb[4].mxu0 %vm1666_vm4, %v1722_v18 }
 0x2b1   : > { %1264 = vmatpush1.bf16.msra.mxu0 %v2027_v17  ;;  %1295 = vmatprep.mubr.bf16.mxu0 %v2299_v9  ;;  %v2045_v9 = vld [vmem:[#allocation7 + $0x2e0] ss:$8 sps:$4 sm:$0xff]  }
 0x2b2   : > { %1265 = vmatprep.subr.bf16.mxu0 %v2032_v19 }
 0x2b5   : > { %1266 = vmatpush1.bf16.msra.mxu0 %v2030_v56 }
 0x2b6   : > { %1267 = vmatprep.subr.bf16.mxu0 %v2035_v21 }
 0x2b9   : > { %1268 = vmatpush1.bf16.msra.mxu0 %v2033_v22 }
 0x2ba   : > { %1269 = vmatprep.subr.bf16.mxu0 %v2038_v23 }
 0x2bd   : > { %1270 = vmatpush1.bf16.msra.mxu0 %v2036_v24 }
 0x2be   : > { %1271 = vmatprep.subr.bf16.mxu0 %v2041_v25 }
 0x2c1   : > { %1272 = vmatpush1.bf16.msra.mxu0 %v2039_v26 }
 0x2c2   : > { %1273 = vmatprep.subr.bf16.mxu0 %v2044_v2 }
 0x2c5   : > { %1274 = vmatpush1.bf16.msra.mxu0 %v2042_v27 }
 0x2c6   : > { %1275 = vmatprep.subr.bf16.mxu0 %v2047_v28 }
 0x2c9   : > { %1276 = vmatpush1.bf16.msra.mxu0 %v2045_v9 }
 0x2ca   : > { %1277 = vmatprep.subr.bf16.mxu0 %v2050_v29 }
 0x2cd   : > { %1278 = vmatpush1.bf16.msra.mxu0 %v2048_v32 }
 0x2d0   : > { %1296 = vmatmul.mubr.bf16.vlgmr.msra.gmra.mrb[4].mxu0 %v970_v34 }
 0x3a3   : > { %v1297_v45 = vpop.f32.mrb[4].mxu0 }
 0x3a4   : > { %v1299_v46 = vpop.f32.mrb[5].mxu0  ;;  %v1800_v55 = vadd.f32 %v1297_v45, %v975_v0 }
 0x3a5   : > { %v1801_v47 = vadd.f32 %v1299_v46, %v979_v44  ;;  %v1301_v48 = vpop.f32.mrb[6].mxu0 }
 0x3a6   : > { %v1302_v49 = vpop.f32.mrb[7].mxu0 }
 0x3a7   : > { %v1724_v50 = vmul.f32 -1.442695, %v1801_v47 }
 0x3a9   : > { %2063 = vpow2.f32 %v1724_v50 }
 0x3b3   : > { %v2064_v53 = vpop.eup %2063 }
 0x3b4   : > { %v1307_v54 = vadd.f32 1.0, %v2064_v53 }
 0x3b6   : > { %2065 = vrcp.f32 %v1307_v54 }
 0x3c0   : > { %v2066_v57 = vpop.eup %2065 }
 0x3c1   : > { %v1310_v52 = vmul.f32 %v2066_v57, %v1800_v55 }
 0x3c3   : > { %v1311_v58 = vadd.f32 %v1310_v52, %v2614_v8 }
 0x3c5   : > { %v1312_v59 = vmul.f32 0.70710677, %v1311_v58 }
 0x3c7   : > { %v1313_v60 = vpack.c.bf16 %v1312_v59, %v1312_v59 }
 0x3c9   : > { %1795 = vmatmul.mubr.bf16.vlgmr.msra.gmra.mrb[4].mxu1 %v1313_v60 }
 0x49c   : > { %v1419_v51 = vpop.f32.mrb[4].mxu1 }
 0x49d   : > { %v1420_v62 = vadd.f32 %v1725_v61, %v1419_v51  ;;  %v1796_v63 = vpop.f32.mrb[5].mxu1 }
 0x49e   : > { %v1422_v1 = vpop.f32.mrb[6].mxu1 }
 0x49f   : > { %1425 = vst [vmem:[%s368_s26] sm:$0xff] %v1420_v62  ;;  %v1426_v3 = vadd.f32 %v1420_v62, %v2570_v20  ;;  %v1797_v4 = vpop.f32.mrb[7].mxu1 }
 0x4a0   : > { %2194 = shalt.err (!%p2191_p4)
}
 0x4a1   : > { %s2195_s22 = scalar_lea.hbm %s2652_s16, 128  ;;  %s2199_s24 = scalar_lea.hbm %s2743_s7, 256 }
 0x4a2   : > { %p2196_p0 = scmp.ne.s32.totalorder %s2652_s16, %s2195_s22  ;;  %p2200_p8 = scmp.lt.u32.totalorder %s2652_s16, %s2743_s7 }
 0x4a3   : > { %p2201_p13 = scmp.lt.u32.totalorder %s2199_s24, %s2195_s22  ;;  %p2203_p10 = scmp.lt.u32.totalorder %s2195_s22, %s2652_s16 }
 0x4a4   : > { %p2197_p9 = pnand %p2196_p0, %p2495_p5 }
 0x4a5   : > { %p2202_p6 = por %p2201_p13, %p2200_p8 }
 0x4a6   : > { %p2198_p11 = pneg %p2197_p9 }
 0x4a7   : > { %p2204_p3 = por %p2203_p10, %p2202_p6 }
 0x4a9   : > { %p2205_p7 = pnand %p2204_p3, %p2198_p11 }
 0x4ab   : > { %2208 = shalt.err (!%p2205_p7)
}
 0x4ac   : > { %1824 = dma.vmem_to_hbm [thread:$0]  (%p2495_p5), %s2654_s10, 128, %s2652_s16, %s1430_s23   ;;  %v1427_v20 = vmul.f32 0.70710677, %v1426_v3 }
 0x4ad   : > { %s2689_s26 = scalar_lea.hbm %s2744_s8, %s1736_s20  ;;  %s1435_s22 = scalar_lea.sflag [#allocation12], %s2540_s1 }
 0x4ae   : > { %1428 = vst [vmem:[%s375_s11] sm:$0xff] %v1427_v20  ;;  %s2209_s15 = scalar_lea.vmem %s2692_s13, 128  ;;  %s2301_s10 = smov [#allocation11]  }
 0x4af   : > { %p2210_p12 = scmp.ne.s32.totalorder %s2692_s13, %s2209_s15  ;;  %s2213_s9 = sshll.u32 %s2301_s10, 4  ;;  %s2214_s9 = int_to_ptr.vmem [resolvable:$false] %s2213_s9 }
 0x4b0   : > { %s2215_s16 = scalar_lea.vmem %s2214_s9, 256  ;;  %p2216_p4 = scmp.lt.s32.totalorder %s2692_s13, %s2214_s9 }
 0x4b1   : > { %p2211_p1 = pnand %p2210_p12, %p2495_p5  ;;  %p2217_p0 = scmp.lt.s32.totalorder %s2215_s16, %s2209_s15 }
 0x4b3   : > { %p2212_p2 = pneg %p2211_p1  ;;  %p2218_p9 = por %p2217_p0, %p2216_p4 }
 0x4b5   : > { %p2219_p11 = pnand %p2218_p9, %p2212_p2 }
 0x4b7   : > { %2222 = shalt.err (!%p2219_p11)
}
 0x4b8   : > { %s2223_s1 = scalar_lea.hbm %s2689_s26, 128  ;;  %s2227_s11 = scalar_lea.hbm %s2744_s8, 256 }
 0x4b9   : > { %p2224_p8 = scmp.ne.s32.totalorder %s2689_s26, %s2223_s1  ;;  %p2228_p10 = scmp.lt.u32.totalorder %s2689_s26, %s2744_s8 }
 0x4ba   : > { %p2229_p3 = scmp.lt.u32.totalorder %s2227_s11, %s2223_s1  ;;  %p2231_p12 = scmp.lt.u32.totalorder %s2223_s1, %s2689_s26 }
 0x4bb   : > { %p2225_p13 = pnand %p2224_p8, %p2495_p5 }
 0x4bc   : > { %p2230_p7 = por %p2229_p3, %p2228_p10 }
 0x4bd   : > { %p2226_p6 = pneg %p2225_p13 }
 0x4be   : > { %p2232_p1 = por %p2231_p12, %p2230_p7 }
 0x4c0   : > { %p2233_p2 = pnand %p2232_p1, %p2226_p6 }
 0x4c2   : > { %2236 = shalt.err (!%p2233_p2)
}
 0x4c3   : > { %1825 = dma.vmem_to_hbm [thread:$0]  (%p2495_p5), %s2692_s13, 128, %s2689_s26, %s1435_s22  }
 0x4c4 PF: > { %s2774_s14 = sld [smem:[#allocation18_spill]]  ;;  %s2775_s17 = sld [smem:[#allocation19_spill]] }
 0x4c5   : > { %p2777_p0 = scmp.ge.s32.totalorder %s2287_s30, 2 }
 0x4ca   : > { %s1473_s18 = sand.u32 1, %s2774_s14   ;;  %p2776_p4 = scmp.ne.s32.totalorder %s2775_s17, 0 }
 0x4cb   : > { %s1474_s21 = scalar_lea.sflag [#allocation4], %s1473_s18 }
 0x4cc   : > { %p1843_p9 = pnand %p2777_p0, %p2776_p4 }
 0x4ce   : > { %2266 = dma.done.wait (!%p1843_p9), %s1474_s21, 128  }
 0x4cf   : > { %2268 = vsyncadd (!%p1843_p9), %s1474_s21, 4294967168  ;;  %s1483_s15 = scalar_lea.sflag [#allocation12], %s1473_s18 }
 0x4d0   : > { %2270 = dma.done.wait (!%p1843_p9), %s1483_s15, 128  }
 0x4d1   : > { %2272 = vsyncadd (!%p1843_p9), %s1483_s15, 4294967168  ;;  %p27_p5 = scmp.ge.s32.totalorder %s2460_s25, 4   ;;  %s2778_s27 = smov %s2279_s28 }
 0x4d2   : > { %s2779_s28 = smov %s2283_s29  ;;  %s2780_s29 = smov %s2491_s19 }
 0x4d3   : > { %s2781_s30 = smov %s2460_s25  ;;  %29 = sbr.rel (!%p27_p5) target bundleno = 11 (0xb), region = 124 }
 0x4da   :  { %1488 = vsyncpa [#allocation3], 1 }
 0x4db   :  { %1490 = vsyncpa [#allocation3 + $0x1], 1 }
 0x4dc   :  { %1491 = vsyncpa [#allocation6], 1 }
 0x4dd   :  { %1492 = vsyncpa [#allocation9], 1 }
 0x4de   :  { %1493 = vsyncpa [#allocation4], 1 }
 0x4df   :  { %1495 = vsyncpa [#allocation4 + $0x1], 1 }
 0x4e0   :  { %1496 = vsyncpa [#allocation12], 1 }
 0x4e1   :  { %1498 = vsyncpa [#allocation12 + $0x1], 1 }

</bundles_post_ra>
